<compile_context>
chip_gen: v7x
topology: tpu7x:2x2x1
jax: 0.10.0
libtpu: 0.0.40
codegen_flags: <defaults>
</compile_context>

<pallas_src>
import functools

import jax
import jax.numpy as jnp
import numpy as np
from jax.experimental import pallas as pl
from jax.experimental.pallas import tpu as pltpu


def _round_up(x, m):
    return ((x + m - 1) // m) * m


def _pad2d(x, rows, cols):
    return jnp.pad(x, ((0, rows - x.shape[0]), (0, cols - x.shape[1])))


def _vmem_block_bytes(block_shape, dtype):
    """Conservative VMEM footprint of one block ((sublane, 128)-tiled)."""
    dims = [int(d) for d in block_shape if d is not None]
    if len(dims) < 2:
        dims = [1] * (2 - len(dims)) + dims
    itemsize = jnp.dtype(dtype).itemsize
    sublane = 8 * max(1, 4 // itemsize)          # 8 (f32/i32), 16 (bf16), 32 (i8)
    lead = 1
    for d in dims[:-2]:
        lead *= d
    rows = _round_up(dims[-2], sublane)
    lanes = _round_up(dims[-1], 128)
    return lead * rows * lanes * itemsize


def attention_head_kernel(gidx_ref, prior_ref, q_ref, k_ref, v_ref,
                          m_ref, groups_ref, out_ref):
    # Zero the resident partial accumulator at the start of each core-split's
    # reduction loop (inner grid axis).
    @pl.when(pl.program_id(1) == 0)
    def _init():
        out_ref[...] = jnp.zeros_like(out_ref)

    # Fused projection: e = sigmoid( sum( (q @ M) * k, -1 ) ),  M = Wqk^T Wk.
    # Single MXU matmul per tile, f32 accumulation.
    qm = jnp.dot(q_ref[...], m_ref[...],
                 preferred_element_type=jnp.float32)                   # [T, D]
    e_attn = jax.nn.sigmoid(
        jnp.sum(qm * k_ref[...].astype(jnp.float32),
                axis=-1, keepdims=True))                               # [T, 1]
    scale = e_attn * prior_ref[...]                                    # [T, 1] f32

    # weighted = value * e_attn * prior.  Multiply in value's dtype (bf16 VPU
    # on v6e/v7x) -- no full-width up/down-cast pass over the value tile.
    weighted = v_ref[...] * scale.astype(v_ref.dtype)                  # [T, Dv]

    # One-hot scatter matrix [G, T] from the resident group-id column (no
    # per-step iota).  Padded rows carry group_idx = -1 -> match nothing.
    one_hot = (groups_ref[...] == gidx_ref[...]).astype(v_ref.dtype)   # [G, T]

    # Single fused MXU accumulate (in-place MRB accumulation on v7x).
    out_ref[...] += jnp.dot(one_hot, weighted,
                            preferred_element_type=jnp.float32)        # [G, Dv]


@functools.partial(
    jax.jit,
    static_argnames=("num_groups", "tile_n", "compute_dtype",
                     "num_core_splits", "pad_value_lanes"))
def attention_head(query, key, value, group_idx, prior_scores, wqk, wk, *,
                   num_groups, tile_n=512, compute_dtype=jnp.float32,
                   num_core_splits=2, pad_value_lanes=True):
    """Pallas implementation of AttentionHead.forward (return_rankings=False).

    num_groups must be a static Python int (== group_idx[-1] + 1 in the
    PyTorch module).  compute_dtype=bf16 halves q/k/v HBM traffic and runs
    the MXU at full rate on all of v5e/v6e/v7x; accumulation and the sigmoid
    stay in f32.  Group indices outside [0, num_groups) are dropped
    (segment_sum semantics).
    """
    n, d_in = query.shape
    dv = value.shape[1]

    # ---- tiling / padding (all static Python ints) ------------------------
    tile_n = max(128, _round_up(tile_n, 128))
    eff_tile = min(tile_n, _round_up(max(n, 1), 128))       # multiple of 128
    num_core_splits = max(1, int(num_core_splits))
    n_pad = _round_up(max(n, 1), eff_tile * num_core_splits)
    tiles_per_split = (n_pad // eff_tile) // num_core_splits

    g_pad = _round_up(max(num_groups, 1), 8)                 # sublane-aligned
    dv_pad = _round_up(dv, 128) if pad_value_lanes else dv   # lane-dense output

    # Padded rows: prior = 0 AND group_idx = -1, so they contribute to no group.
    q = _pad2d(query.astype(compute_dtype), n_pad, d_in)
    k = _pad2d(key.astype(compute_dtype), n_pad, d_in)
    v = _pad2d(value.astype(compute_dtype), n_pad, dv_pad)
    prior = _pad2d(prior_scores.astype(jnp.float32).reshape(n, 1), n_pad, 1)
    gidx = jnp.pad(group_idx.astype(jnp.int32), (0, n_pad - n),
                   constant_values=-1).reshape(1, n_pad)

    # Fused projection weight, computed once in f32 at full precision.
    m = jnp.dot(wqk.astype(jnp.float32).T, wk.astype(jnp.float32),
                precision=jax.lax.Precision.HIGHEST).astype(compute_dtype)
    groups_col = jnp.arange(g_pad, dtype=jnp.int32).reshape(g_pad, 1)

    # ---- VMEM budget (double-buffered streams + single-buffered residents) --
    streamed = (
        _vmem_block_bytes((eff_tile, d_in), compute_dtype)        # q
        + _vmem_block_bytes((eff_tile, d_in), compute_dtype)      # k
        + _vmem_block_bytes((eff_tile, dv_pad), compute_dtype)    # v
        + _vmem_block_bytes((eff_tile, 1), jnp.float32)           # prior
        + _vmem_block_bytes((1, eff_tile), jnp.int32)             # group_idx
        + _vmem_block_bytes((g_pad, dv_pad), jnp.float32))        # accumulator
    resident = (
        _vmem_block_bytes((d_in, d_in), compute_dtype)            # M
        + _vmem_block_bytes((g_pad, 1), jnp.int32))               # group ids
    vmem_need = 2 * streamed + resident
    vmem_limit = int(min(max(2 * vmem_need + (2 << 20), 16 << 20), 64 << 20))

    itemsize = jnp.dtype(compute_dtype).itemsize
    cost = pl.CostEstimate(
        flops=int(n_pad * (2 * d_in * d_in + 2 * g_pad * dv_pad
                           + 4 * d_in + 2 * dv_pad)),
        transcendentals=int(n_pad),
        bytes_accessed=int((q.size + k.size + v.size + m.size) * itemsize
                           + prior.size * 4 + gidx.size * 4 + groups_col.size * 4
                           + num_core_splits * g_pad * dv_pad * 4),
    )

    row_block = lambda c, i: (c * tiles_per_split + i, 0)

    partials = pl.pallas_call(
        attention_head_kernel,
        out_shape=jax.ShapeDtypeStruct((num_core_splits, g_pad, dv_pad),
                                       jnp.float32),
        grid_spec=pltpu.PrefetchScalarGridSpec(
            num_scalar_prefetch=0,
            grid=(num_core_splits, tiles_per_split),
            in_specs=[
                # group_idx stored lane-major [1, N] -> one-hot needs no transpose.
                pl.BlockSpec((1, eff_tile),
                             lambda c, i: (0, c * tiles_per_split + i)),
                pl.BlockSpec((eff_tile, 1), row_block),           # prior  [N, 1]
                pl.BlockSpec((eff_tile, d_in), row_block),        # query
                pl.BlockSpec((eff_tile, d_in), row_block),        # key
                pl.BlockSpec((eff_tile, dv_pad), row_block),      # value
                # Resident blocks: constant index_map -> single-buffered.
                pl.BlockSpec((d_in, d_in), lambda c, i: (0, 0),
                             pipeline_mode=pl.Buffered(1)),       # M = Wqk^T Wk
                pl.BlockSpec((g_pad, 1), lambda c, i: (0, 0),
                             pipeline_mode=pl.Buffered(1)),       # group ids col
            ],
            # Per-core-split resident accumulator; revisited along the inner axis.
            out_specs=pl.BlockSpec((None, g_pad, dv_pad),
                                   lambda c, i: (c, 0, 0)),
        ),
        compiler_params=pltpu.CompilerParams(
            dimension_semantics=("parallel", "arbitrary"),
            vmem_limit_bytes=vmem_limit),
        cost_estimate=cost,
    )(gidx, prior, q, k, v, m, groups_col)

    # Cheap cross-core reduction + unpad in the wrapper.
    return partials.sum(axis=0)[:num_groups, :dv]


def _reference(query, key, value, group_idx, prior_scores, wqk, wk, num_groups):
    xq = query @ wqk.T
    xk = key @ wk.T
    e_attn = jax.nn.sigmoid(jnp.sum(xq * xk, axis=-1))
    weighted = value * e_attn[:, None] * prior_scores[:, None]
    return jax.ops.segment_sum(weighted, group_idx, num_segments=num_groups)


if __name__ == "__main__":
    key0 = jax.random.PRNGKey(0)
    k1, k2, k3, k4, k5, k6 = jax.random.split(key0, 6)

    N = 8            # number of nodes / edges
    INPUT_SIZE = 32  # input feature size
    HEAD_SIZE = 16   # attention head size
    VALUE_DIM = 32   # value feature size

    query = jax.random.normal(k1, (N, INPUT_SIZE), dtype=jnp.float32)
    key_ = jax.random.normal(k2, (N, INPUT_SIZE), dtype=jnp.float32)
    value = jax.random.normal(k3, (N, VALUE_DIM), dtype=jnp.float32)
    prior_scores = jax.random.uniform(k4, (N,), dtype=jnp.float32)
    group_idx = jnp.array([0, 0, 1, 1, 1, 2, 2, 3], dtype=jnp.int32)

    # Same shapes as nn.Linear(input_size, head_size, bias=False).weight
    wqk = 0.1 * jax.random.normal(k5, (HEAD_SIZE, INPUT_SIZE), dtype=jnp.float32)
    wk = 0.1 * jax.random.normal(k6, (HEAD_SIZE, INPUT_SIZE), dtype=jnp.float32)

    # dim_size = group_idx[-1] + 1, resolved once on the host (static int).
    num_groups = int(group_idx[-1]) + 1

    ref = _reference(query, key_, value, group_idx, prior_scores, wqk, wk,
                     num_groups)

    # f32 path (fused-projection re-association => slightly looser rtol).
    out_f32 = attention_head(query, key_, value, group_idx, prior_scores,
                             wqk, wk, num_groups=num_groups,
                             compute_dtype=jnp.float32)
    out_f32 = jax.block_until_ready(out_f32)
    np.testing.assert_allclose(np.asarray(out_f32), np.asarray(ref),
                               rtol=1e-4, atol=1e-5)

    # bf16 MXU inputs / f32 accumulation (full-rate MXU on v5e/v6e/v7x).
    out_bf16 = attention_head(query, key_, value, group_idx, prior_scores,
                              wqk, wk, num_groups=num_groups,
                              compute_dtype=jnp.bfloat16)
    out_bf16 = jax.block_until_ready(out_bf16)
    np.testing.assert_allclose(np.asarray(out_bf16), np.asarray(ref),
                               rtol=5e-2, atol=5e-2)

    print("KERNEL_OK")
</pallas_src>

<mosaic_0001>
module attributes {stable_mosaic.version = 11 : i64} {
  func.func @attention_head_kernel(%arg0: i32, %arg1: i32, %arg2: memref<1x128xi32, #tpu.memory_space<vmem>>, %arg3: memref<128x1xf32, #tpu.memory_space<vmem>>, %arg4: memref<128x32xf32, #tpu.memory_space<vmem>>, %arg5: memref<128x32xf32, #tpu.memory_space<vmem>>, %arg6: memref<128x128xf32, #tpu.memory_space<vmem>>, %arg7: memref<32x32xf32, #tpu.memory_space<vmem>>, %arg8: memref<8x1xi32, #tpu.memory_space<vmem>>, %arg9: memref<1x8x128xf32, #tpu.memory_space<vmem>>) attributes {dimension_semantics = [#tpu.dimension_semantics<parallel>, #tpu.dimension_semantics<arbitrary>], iteration_bounds = array<i64: 2, 1>, scalar_prefetch = 0 : i64, scratch_operands = 0 : i64, tpu.core_type = #tpu.core_type<tc>, window_params = [{transform_indices = @transform_0, window_bounds = array<i64: 1, 128>}, {transform_indices = @transform_1, window_bounds = array<i64: 128, 1>}, {transform_indices = @transform_2, window_bounds = array<i64: 128, 32>}, {transform_indices = @transform_3, window_bounds = array<i64: 128, 32>}, {transform_indices = @transform_4, window_bounds = array<i64: 128, 128>}, {pipeline_mode = #tpu.pipeline_mode<synchronous>, transform_indices = @transform_5, window_bounds = array<i64: 32, 32>}, {pipeline_mode = #tpu.pipeline_mode<synchronous>, transform_indices = @transform_6, window_bounds = array<i64: 8, 1>}, {transform_indices = @transform_7, window_bounds = array<i64: 1, 8, 128>}]} {
    %c0_i32 = arith.constant 0 : i32
    %0 = arith.cmpi eq, %arg1, %c0_i32 : i32
    %1 = arith.extui %0 : i1 to i32
    %c0_i32_0 = arith.constant 0 : i32
    %2 = arith.cmpi ne, %1, %c0_i32_0 : i32
    scf.if %2 {
      %cst_23 = arith.constant 0.000000e+00 : f32
      %34 = vector.broadcast %cst_23 : f32 to vector<8x128xf32>
      %c0_24 = arith.constant 0 : index
      %c0_25 = arith.constant 0 : index
      %c0_26 = arith.constant 0 : index
      %35 = vector.load %arg9[%c0_24, %c0_25, %c0_26] : memref<1x8x128xf32, #tpu.memory_space<vmem>>, vector<1x8x128xf32>
      %36 = vector.shape_cast %35 : vector<1x8x128xf32> to vector<8x128xf32>
      %37 = vector.shape_cast %34 : vector<8x128xf32> to vector<1x8x128xf32>
      tpu.vector_store %arg9[%c0_24, %c0_25, %c0_26], %37 {strides = array<i32>} : memref<1x8x128xf32, #tpu.memory_space<vmem>>, vector<1x8x128xf32>,
    } else {
    }
    %c0 = arith.constant 0 : index
    %c0_1 = arith.constant 0 : index
    %3 = vector.load %arg4[%c0, %c0_1] : memref<128x32xf32, #tpu.memory_space<vmem>>, vector<128x32xf32>
    %c0_2 = arith.constant 0 : index
    %c0_3 = arith.constant 0 : index
    %4 = vector.load %arg7[%c0_2, %c0_3] : memref<32x32xf32, #tpu.memory_space<vmem>>, vector<32x32xf32>
    %cst = arith.constant dense<0.000000e+00> : vector<128x32xf32>
    %5 = tpu.matmul %3, %4, %cst {dimension_numbers = #tpu.dot_dimension_numbers<[1], [0], [0], [1], [0, 0, 1, 1], [], []>} : vector<128x32xf32>, vector<32x32xf32>, vector<128x32xf32> -> vector<128x32xf32>
    %c0_4 = arith.constant 0 : index
    %c0_5 = arith.constant 0 : index
    %6 = vector.load %arg5[%c0_4, %c0_5] : memref<128x32xf32, #tpu.memory_space<vmem>>, vector<128x32xf32>
    %7 = arith.mulf %5, %6 : vector<128x32xf32>
    %cst_6 = arith.constant dense<0.000000e+00> : vector<128xf32>
    %8 = vector.multi_reduction <add>, %7, %cst_6 [1] : vector<128x32xf32> to vector<128xf32>
    %9 = vector.shape_cast %8 : vector<128xf32> to vector<128x1xf32>
    %10 = arith.negf %9 : vector<128x1xf32>
    %11 = math.exp %10 : vector<128x1xf32>
    %cst_7 = arith.constant 1.000000e+00 : f32
    %12 = vector.broadcast %cst_7 : f32 to vector<128x1xf32>
    %13 = arith.addf %12, %11 : vector<128x1xf32>
    %14 = arith.divf %12, %13 : vector<128x1xf32>
    %c0_8 = arith.constant 0 : index
    %c0_9 = arith.constant 0 : index
    %15 = vector.load %arg3[%c0_8, %c0_9] : memref<128x1xf32, #tpu.memory_space<vmem>>, vector<128x1xf32>
    %16 = arith.mulf %14, %15 : vector<128x1xf32>
    %c0_10 = arith.constant 0 : index
    %c0_11 = arith.constant 0 : index
    %17 = vector.load %arg6[%c0_10, %c0_11] : memref<128x128xf32, #tpu.memory_space<vmem>>, vector<128x128xf32>
    %18 = vector.broadcast %16 : vector<128x1xf32> to vector<128x128xf32>
    %19 = arith.mulf %17, %18 : vector<128x128xf32>
    %c0_12 = arith.constant 0 : index
    %c0_13 = arith.constant 0 : index
    %20 = vector.load %arg8[%c0_12, %c0_13] : memref<8x1xi32, #tpu.memory_space<vmem>>, vector<8x1xi32>
    %c0_14 = arith.constant 0 : index
    %c0_15 = arith.constant 0 : index
    %21 = vector.load %arg2[%c0_14, %c0_15] : memref<1x128xi32, #tpu.memory_space<vmem>>, vector<1x128xi32>
    %22 = vector.broadcast %20 : vector<8x1xi32> to vector<8x128xi32>
    %23 = vector.broadcast %21 : vector<1x128xi32> to vector<8x128xi32>
    %24 = arith.cmpi eq, %22, %23 : vector<8x128xi32>
    %25 = arith.extui %24 : vector<8x128xi1> to vector<8x128xi32>
    %26 = arith.sitofp %25 : vector<8x128xi32> to vector<8x128xf32>
    %c0_16 = arith.constant 0 : index
    %c0_17 = arith.constant 0 : index
    %c0_18 = arith.constant 0 : index
    %27 = vector.load %arg9[%c0_16, %c0_17, %c0_18] : memref<1x8x128xf32, #tpu.memory_space<vmem>>, vector<1x8x128xf32>
    %28 = vector.shape_cast %27 : vector<1x8x128xf32> to vector<8x128xf32>
    %cst_19 = arith.constant dense<0.000000e+00> : vector<8x128xf32>
    %29 = tpu.matmul %26, %19, %cst_19 {dimension_numbers = #tpu.dot_dimension_numbers<[1], [0], [0], [1], [0, 0, 1, 1], [], []>} : vector<8x128xf32>, vector<128x128xf32>, vector<8x128xf32> -> vector<8x128xf32>
    %30 = arith.addf %28, %29 : vector<8x128xf32>
    %c0_20 = arith.constant 0 : index
    %c0_21 = arith.constant 0 : index
    %c0_22 = arith.constant 0 : index
    %31 = vector.load %arg9[%c0_20, %c0_21, %c0_22] : memref<1x8x128xf32, #tpu.memory_space<vmem>>, vector<1x8x128xf32>
    %32 = vector.shape_cast %31 : vector<1x8x128xf32> to vector<8x128xf32>
    %33 = vector.shape_cast %30 : vector<8x128xf32> to vector<1x8x128xf32>
    tpu.vector_store %arg9[%c0_20, %c0_21, %c0_22], %33 {strides = array<i32>} : memref<1x8x128xf32, #tpu.memory_space<vmem>>, vector<1x8x128xf32>,
    return
  }
  func.func @transform_0(%arg0: i32, %arg1: i32) -> (i32, i32) {
    %c1_i32 = arith.constant 1 : i32
    %0 = arith.muli %arg0, %c1_i32 : i32
    %1 = arith.addi %0, %arg1 : i32
    %c0_i32 = arith.constant 0 : i32
    %c0_i32_0 = arith.constant 0 : i32
    return %c0_i32, %1 : i32, i32
  }
  func.func @transform_1(%arg0: i32, %arg1: i32) -> (i32, i32) {
    %c1_i32 = arith.constant 1 : i32
    %0 = arith.muli %arg0, %c1_i32 : i32
    %1 = arith.addi %0, %arg1 : i32
    %c0_i32 = arith.constant 0 : i32
    %c0_i32_0 = arith.constant 0 : i32
    return %1, %c0_i32 : i32, i32
  }
  func.func @transform_2(%arg0: i32, %arg1: i32) -> (i32, i32) {
    %c1_i32 = arith.constant 1 : i32
    %0 = arith.muli %arg0, %c1_i32 : i32
    %1 = arith.addi %0, %arg1 : i32
    %c0_i32 = arith.constant 0 : i32
    %c0_i32_0 = arith.constant 0 : i32
    return %1, %c0_i32 : i32, i32
  }
  func.func @transform_3(%arg0: i32, %arg1: i32) -> (i32, i32) {
    %c1_i32 = arith.constant 1 : i32
    %0 = arith.muli %arg0, %c1_i32 : i32
    %1 = arith.addi %0, %arg1 : i32
    %c0_i32 = arith.constant 0 : i32
    %c0_i32_0 = arith.constant 0 : i32
    return %1, %c0_i32 : i32, i32
  }
  func.func @transform_4(%arg0: i32, %arg1: i32) -> (i32, i32) {
    %c1_i32 = arith.constant 1 : i32
    %0 = arith.muli %arg0, %c1_i32 : i32
    %1 = arith.addi %0, %arg1 : i32
    %c0_i32 = arith.constant 0 : i32
    %c0_i32_0 = arith.constant 0 : i32
    return %1, %c0_i32 : i32, i32
  }
  func.func @transform_5(%arg0: i32, %arg1: i32) -> (i32, i32) {
    %c0_i32 = arith.constant 0 : i32
    %c0_i32_0 = arith.constant 0 : i32
    %c0_i32_1 = arith.constant 0 : i32
    return %c0_i32, %c0_i32_0 : i32, i32
  }
  func.func @transform_6(%arg0: i32, %arg1: i32) -> (i32, i32) {
    %c0_i32 = arith.constant 0 : i32
    %c0_i32_0 = arith.constant 0 : i32
    %c0_i32_1 = arith.constant 0 : i32
    return %c0_i32, %c0_i32_0 : i32, i32
  }
  func.func @transform_7(%arg0: i32, %arg1: i32) -> (i32, i32, i32) {
    %c0_i32 = arith.constant 0 : i32
    %c0_i32_0 = arith.constant 0 : i32
    %c0_i32_1 = arith.constant 0 : i32
    return %arg0, %c0_i32, %c0_i32_0 : i32, i32, i32
  }
}

</mosaic_0001>

<bundles_post_ra>
// kernel: attention_head.1
= control target key start
LH: loop header
LB: loop body
LE: loop exit
PB: predicated region body
PF: predicated region fallthrough
CT: control target
= control target key end

     0   :  { %s1487_s24 = smov 0   ;;  %s1489_s25 = smov 0   ;;  %s1670_s0 = inlined_call_operand.vmem [shape: s32[1,256], index: 0, kind: input, shape index: {}]   ;;  %s1671_s1 = inlined_call_operand.vmem [shape: f32[256,1], index: 1, kind: input, shape index: {}]   ;;  %s1672_s2 = inlined_call_operand.vmem [shape: f32[256,32], index: 2, kind: input, shape index: {}]   ;;  %s1673_s3 = inlined_call_operand.vmem [shape: f32[256,32], index: 3, kind: input, shape index: {}]   ;;  %s1674_s4 = inlined_call_operand.vmem [shape: f32[256,128], index: 4, kind: input, shape index: {}]   ;;  %s1675_s5 = inlined_call_operand.vmem [shape: f32[32,32], index: 5, kind: input, shape index: {}]   ;;  %s1676_s6 = inlined_call_operand.vmem [shape: s32[8,1], index: 6, kind: input, shape index: {}]   ;;  %s1677_s7 = inlined_call_operand.vmem [shape: f32[2,8,128], index: 7, kind: output, shape index: {}]  }
   0x1   :  { %s1491_s26 = smov 0  }
   0x2 LB: > { %s29_s27 = sadd.s32 1, %s1436_s25  ;;  %p1140_p0 = scmp.ge.s32.totalorder %s1440_s26, 1  ;;  %s1440_s26 = sphi %s1491_s26, %s17_s26   ;;  %s1436_s25 = sphi %s1489_s25, %s1679_s25   ;;  %s1432_s24 = sphi %s1487_s24, %s1678_s24  }
   0x3   : > { %p31_p1 = scmp.ge.s32.totalorder %s29_s27, 2  ;;  %p311_p2 = scmp.lt.s32.totalorder %s1440_s26, 3 }
   0x5   : > { %s1681_s27 = smov (%p31_p1, %s29_s27), 0  ;;  %p312_p3 = pnand %p1140_p0, %p311_p2 }
   0x6   : > { %v427_v0 = vld [vmem:[%s1675_s5] sm:$0xff] (!%p312_p3)  ;;  %v428_v1 = vld [vmem:[%s1675_s5 + $0x8] sm:$0xff] (!%p312_p3)  ;;  %v429_v2 = vld [vmem:[%s1675_s5 + $0x10] sm:$0xff] (!%p312_p3)  ;;  %s1141_s11 = sshll.u32 (!%p312_p3), %s1432_s24, 4  ;;  %vm431_vm0 = vcmask (!%p312_p3), 261120   ;;  %vm1444_vm1 = vmmov (!%p312_p3), 0  }
   0x7   : > { %315 = sbr.rel (%p312_p3) target bundleno = 797 (0x31d), region = 48  ;;  %v1291_v3 = vpack.c.bf16 (!%p312_p3), %v428_v1, %v427_v0  ;;  %v430_v4 = vld [vmem:[%s1675_s5 + $0x18] sm:$0xff] (!%p312_p3)  ;;  %p372_p4 = scmp.lt.s32.totalorder (!%p312_p3), %s1141_s11, 31 }
   0x8   : > { %v1295_v5 = vpack.c.bf16 (!%p312_p3), %v430_v4, %v429_v2  ;;  %p366_p5 = scmp.lt.s32.totalorder (!%p312_p3), %s1432_s24, 1 }
   0x9   : > { %1292 = vmatprep.subr.bf16.mxu0 (!%p312_p3), %v1291_v3 }
   0xa   : > { %1294 = vmatpush3.bf16.msra.mxu0 (!%p312_p3), %v1291_v3 }
   0xb   : > { %1296 = vmatprep.subr.bf16.mxu0 (!%p312_p3), %v1295_v5 }
   0xe   : > { %s1683_s11 = smov (!%p372_p4, %s1141_s11), 31  ;;  %1298 = vmatpush3.bf16.msra.mxu0 %v1295_v5  ;;  %s1685_s24 = smov (!%p366_p5, %s1432_s24), 1 }
   0xf   : > { %s1520_s14 = sshll.u32 %s1683_s11, 3  ;;  %s368_s12 = scalar_lea.vmem %s1670_s0, %s1685_s24 }
  0x10   : > { %s1526_s17 = scalar_lea.vmem %s1672_s2, %s1520_s14  ;;  %s1564_s20 = scalar_lea.vmem %s1673_s3, %s1520_s14 }
  0x11   : > { %v411_v6 = vld [vmem:[%s1526_s17] sm:$0xff]  ;;  %v412_v7 = vld [vmem:[%s1526_s17 + $0x8] sm:$0xff]  ;;  %v413_v8 = vld [vmem:[%s1526_s17 + $0x10] sm:$0xff]  ;;  %s1602_s23 = scalar_lea.vmem %s1671_s1, %s1520_s14  ;;  %s1628_s9 = scalar_lea.vmem %s1674_s4, %s1520_s14 }
  0x12   : > { %1232 = vmatprep.mubr.msk.f32.mxu0 %vm431_vm0, %v411_v6  ;;  %v414_v9 = vld [vmem:[%s1526_s17 + $0x18] sm:$0xff]  ;;  %v415_v10 = vld [vmem:[%s1526_s17 + $0x20] sm:$0xff]  ;;  %v416_v11 = vld [vmem:[%s1526_s17 + $0x28] sm:$0xff]  ;;  %s1149_s13 = sshll.u32 %s1685_s24, 3 }
  0x13   : > { %1233 = vmatmul.mubr.msk.f32.vlgmr.msra.gmra.mrb[0].mxu0 %vm431_vm0, %v412_v7  ;;  %v417_v12 = vld [vmem:[%s1526_s17 + $0x30] sm:$0xff]  ;;  %v418_v13 = vld [vmem:[%s1526_s17 + $0x38] sm:$0xff]  ;;  %v419_v14 = vld [vmem:[%s1526_s17 + $0x40] sm:$0xff]  ;;  %s405_s16 = scalar_lea.vmem %s1677_s7, %s1149_s13 }
  0x14   : > { %1235 = vmatprep.mubr.msk.f32.mxu0 %vm431_vm0, %v413_v8  ;;  %v420_v15 = vld [vmem:[%s1526_s17 + $0x48] sm:$0xff]  ;;  %v421_v16 = vld [vmem:[%s1526_s17 + $0x50] sm:$0xff]  ;;  %v422_v17 = vld [vmem:[%s1526_s17 + $0x58] sm:$0xff] }
  0x15   : > { %v423_v18 = vld [vmem:[%s1526_s17 + $0x60] sm:$0xff]  ;;  %v424_v19 = vld [vmem:[%s1526_s17 + $0x68] sm:$0xff]  ;;  %v425_v20 = vld [vmem:[%s1526_s17 + $0x70] sm:$0xff] }
  0x16   : > { %v426_v21 = vld [vmem:[%s1526_s17 + $0x78] sm:$0xff]  ;;  %v625_v22 = vld [vmem:[%s1564_s20] sm:$0xff]  ;;  %v626_v24 = vld [vmem:[%s1564_s20 + $0x8] sm:$0xff] }
  0x17   : > { %1236 = vmatmul.mubr.msk.f32.gmra.mrb[2].mxu0 %vm431_vm0, %v414_v9  ;;  %v628_v27 = vld [vmem:[%s1564_s20 + $0x18] sm:$0xff]  ;;  %v627_v28 = vld [vmem:[%s1564_s20 + $0x10] sm:$0xff]  ;;  %v630_v35 = vld [vmem:[%s1564_s20 + $0x28] sm:$0xff] }
  0x18   : > { %1238 = vmatprep.mubr.msk.f32.mxu0 %vm431_vm0, %v415_v10  ;;  %v629_v37 = vld [vmem:[%s1564_s20 + $0x20] sm:$0xff]  ;;  %v632_v44 = vld [vmem:[%s1564_s20 + $0x38] sm:$0xff]  ;;  %v631_v45 = vld [vmem:[%s1564_s20 + $0x30] sm:$0xff] }
  0x19   : > { %v634_v52 = vld [vmem:[%s1564_s20 + $0x48] sm:$0xff]  ;;  %v633_v53 = vld [vmem:[%s1564_s20 + $0x40] sm:$0xff]  ;;  %v636_v60 = vld [vmem:[%s1564_s20 + $0x58] sm:$0xff] }
  0x1a   : > { %v635_v61 = vld [vmem:[%s1564_s20 + $0x50] sm:$0xff]  ;;  %v638_v4 = vld [vmem:[%s1564_s20 + $0x68] sm:$0xff]  ;;  %v637_v5 = vld [vmem:[%s1564_s20 + $0x60] sm:$0xff] }
  0x1b   : > { %1239 = vmatmul.mubr.msk.f32.gmra.mrb[4].mxu0 %vm431_vm0, %v416_v11 }
  0x1c   : > { %1241 = vmatprep.mubr.msk.f32.mxu0 %vm431_vm0, %v417_v12  ;;  %v640_v12 = vld [vmem:[%s1564_s20 + $0x78] sm:$0xff] }
  0x1f   : > { %1242 = vmatmul.mubr.msk.f32.gmra.mrb[6].mxu0 %vm431_vm0, %v418_v13  ;;  %v639_v13 = vld [vmem:[%s1564_s20 + $0x70] sm:$0xff] }
  0x20   : > { %1244 = vmatprep.mubr.msk.f32.mxu0 %vm431_vm0, %v419_v14 }
  0x23   : > { %1245 = vmatmul.mubr.msk.f32.gmra.mrb[8].mxu0 %vm431_vm0, %v420_v15 }
  0x24   : > { %1247 = vmatprep.mubr.msk.f32.mxu0 %vm431_vm0, %v421_v16 }
  0x27   : > { %1248 = vmatmul.mubr.msk.f32.gmra.mrb[10].mxu0 %vm431_vm0, %v422_v17 }
  0x28   : > { %1250 = vmatprep.mubr.msk.f32.mxu0 %vm431_vm0, %v423_v18 }
  0x2b   : > { %1251 = vmatmul.mubr.msk.f32.gmra.mrb[12].mxu0 %vm431_vm0, %v424_v19 }
  0x2c   : > { %1253 = vmatprep.mubr.msk.f32.mxu0 %vm431_vm0, %v425_v20 }
  0x2f   : > { %1254 = vmatmul.mubr.msk.f32.gmra.mrb[14].mxu0 %vm431_vm0, %v426_v21 }
  0xe6   : > { %v1234_v23 = vpop.f32.mrb[0].mxu0 }
  0xe7   : > { %v546_v25 = vpop.f32.mrb[1].mxu0  ;;  %v642_v29 = vmul.f32 %v1234_v23, %v626_v24 }
  0xe8   : > { %v641_v26 = vmul.f32 %v625_v22, %v546_v25  ;;  %v1442_v22 = vmov 0  }
  0xe9   : > { %v660_v38 = vsel %vm431_vm0, %v642_v29, 0.0  ;;  %1352 = vset.pattern.permute.xlu0 %v1442_v22  ;;  %1353 = vset.pattern.permute.xlu1 %v1442_v22 }
  0xea   : > { %v1237_v30 = vpop.f32.mrb[2].mxu0  ;;  %v657_v31 = vsel %vm431_vm0, %v641_v26, 0.0 }
  0xeb   : > { %v644_v32 = vmul.f32 %v1237_v30, %v628_v27  ;;  %658 = vadd.xlane.f32.xlu0 %v657_v31  ;;  %v556_v33 = vpop.f32.mrb[3].mxu0 }
  0xec   : > { %v643_v34 = vmul.f32 %v627_v28, %v556_v33 }
  0xed   : > { %v666_v36 = vsel %vm431_vm0, %v644_v32, 0.0 }
  0xee   : > { %667 = vadd.xlane.f32.xlu1 %v666_v36  ;;  %v1240_v39 = vpop.f32.mrb[4].mxu0  ;;  %v663_v40 = vsel %vm431_vm0, %v643_v34, 0.0 }
  0xef   : > { %661 = vadd.xlane.f32.xlu0 %v660_v38  ;;  %v646_v41 = vmul.f32 %v1240_v39, %v630_v35  ;;  %v566_v42 = vpop.f32.mrb[5].mxu0 }
  0xf0   : > { %v645_v43 = vmul.f32 %v629_v37, %v566_v42 }
  0xf1   : > { %v672_v48 = vsel %vm431_vm0, %v646_v41, 0.0 }
  0xf2   : > { %664 = vadd.xlane.f32.xlu1 %v663_v40  ;;  %v1243_v46 = vpop.f32.mrb[6].mxu0  ;;  %v669_v47 = vsel %vm431_vm0, %v645_v43, 0.0 }
  0xf3   : > { %v648_v49 = vmul.f32 %v1243_v46, %v632_v44  ;;  %v576_v50 = vpop.f32.mrb[7].mxu0  ;;  %670 = vadd.xlane.f32.xlu0 %v669_v47 }
  0xf4   : > { %v647_v51 = vmul.f32 %v631_v45, %v576_v50 }
  0xf5   : > { %v678_v56 = vsel %vm431_vm0, %v648_v49, 0.0 }
  0xf6   : > { %673 = vadd.xlane.f32.xlu1 %v672_v48  ;;  %v1246_v54 = vpop.f32.mrb[8].mxu0  ;;  %v675_v55 = vsel %vm431_vm0, %v647_v51, 0.0 }
  0xf7   : > { %v650_v57 = vmul.f32 %v1246_v54, %v634_v52  ;;  %v586_v58 = vpop.f32.mrb[9].mxu0  ;;  %676 = vadd.xlane.f32.xlu0 %v675_v55  ;;  %v801_v55 = vld [vmem:[%s1602_s23] sm:$0xff] }
  0xf8   : > { %v649_v59 = vmul.f32 %v633_v53, %v586_v58 }
  0xf9   : > { %v684_v0 = vsel %vm431_vm0, %v650_v57, 0.0 }
  0xfa   : > { %679 = vadd.xlane.f32.xlu1 %v678_v56  ;;  %v1249_v62 = vpop.f32.mrb[10].mxu0  ;;  %v681_v63 = vsel %vm431_vm0, %v649_v59, 0.0 }
  0xfb   : > { %v652_v1 = vmul.f32 %v1249_v62, %v636_v60  ;;  %v596_v2 = vpop.f32.mrb[11].mxu0  ;;  %682 = vadd.xlane.f32.xlu0 %v681_v63 }
  0xfc   : > { %v651_v3 = vmul.f32 %v635_v61, %v596_v2  ;;  %v802_v2 = vld [vmem:[%s1602_s23 + $0x8] sm:$0xff] }
  0xfd   : > { %v690_v8 = vsel %vm431_vm0, %v652_v1, 0.0 }
  0xfe   : > { %685 = vadd.xlane.f32.xlu1 %v684_v0  ;;  %v1252_v6 = vpop.f32.mrb[12].mxu0  ;;  %v687_v7 = vsel %vm431_vm0, %v651_v3, 0.0 }
  0xff   : > { %v654_v9 = vmul.f32 %v1252_v6, %v638_v4  ;;  %v606_v10 = vpop.f32.mrb[13].mxu0  ;;  %688 = vadd.xlane.f32.xlu0 %v687_v7  ;;  %v804_v7 = vld [vmem:[%s1602_s23 + $0x18] sm:$0xff] }
 0x100   : > { %v653_v11 = vmul.f32 %v637_v5, %v606_v10 }
 0x101   : > { %v696_v16 = vsel %vm431_vm0, %v654_v9, 0.0 }
 0x102   : > { %691 = vadd.xlane.f32.xlu1 %v690_v8  ;;  %v1255_v14 = vpop.f32.mrb[14].mxu0  ;;  %v693_v15 = vsel %vm431_vm0, %v653_v11, 0.0 }
 0x103   : > { %v656_v17 = vmul.f32 %v1255_v14, %v640_v12  ;;  %694 = vadd.xlane.f32.xlu0 %v693_v15  ;;  %v616_v18 = vpop.f32.mrb[15].mxu0 }
 0x104   : > { %v655_v19 = vmul.f32 %v639_v13, %v616_v18 }
 0x105   : > { %v702_v21 = vsel %vm431_vm0, %v656_v17, 0.0  ;;  %v1443_v17 = vmov 0.0|0.0  }
 0x106   : > { %697 = vadd.xlane.f32.xlu1 %v696_v16  ;;  %v699_v20 = vsel %vm431_vm0, %v655_v19, 0.0  ;;  %1299 = vmatprep.subr.bf16.mxu1 %v1443_v17 }
 0x107   : > { %700 = vadd.xlane.f32.xlu0 %v699_v20  ;;  %v803_v20 = vld [vmem:[%s1602_s23 + $0x10] sm:$0xff] }
 0x10a   : > { %703 = vadd.xlane.f32.xlu1 %v702_v21 }
 0x178   : > { %v659_v23 = vpop.xlane.xlu0 %658 }
 0x179   : > { %v1166_v24 = vmul.f32 -1.442695, %v659_v23 }
 0x17b   : > { %1354 = vpow2.f32 %v1166_v24  ;;  %v668_v25 = vpop.xlane.xlu1 %667 }
 0x17c   : > { %v1169_v26 = vmul.f32 -1.442695, %v668_v25  ;;  %v662_v27 = vpop.xlane.xlu0 %661  ;;  %v806_v25 = vld [vmem:[%s1602_s23 + $0x28] sm:$0xff] }
 0x17d   : > { %v1167_v28 = vmul.f32 -1.442695, %v662_v27 }
 0x17e   : > { %1356 = vpow2.f32 %v1169_v26 }
 0x17f   : > { %1358 = vpow2.f32 %v1167_v28  ;;  %v665_v29 = vpop.xlane.xlu1 %664 }
 0x180   : > { %v1168_v30 = vmul.f32 -1.442695, %v665_v29  ;;  %v671_v31 = vpop.xlane.xlu0 %670 }
 0x181   : > { %v1170_v33 = vmul.f32 -1.442695, %v671_v31 }
 0x182   : > { %1360 = vpow2.f32 %v1168_v30 }
 0x183   : > { %v674_v32 = vpop.xlane.xlu1 %673 }
 0x184   : > { %v1171_v34 = vmul.f32 -1.442695, %v674_v32  ;;  %v677_v35 = vpop.xlane.xlu0 %676 }
 0x185   : > { %v1355_v36 = vpop.eup %1354  ;;  %v1172_v48 = vmul.f32 -1.442695, %v677_v35 }
 0x186   : > { %v753_v37 = vadd.f32 1.0, %v1355_v36  ;;  %1362 = vpow2.f32 %v1171_v34  ;;  %v810_v34 = vld [vmem:[%s1602_s23 + $0x48] sm:$0xff] }
 0x187   : > { %v680_v38 = vpop.xlane.xlu1 %679  ;;  %1364 = vpow2.f32 %v1170_v33 }
 0x188   : > { %v1357_v39 = vpop.eup %1356  ;;  %1366 = vrcp.f32 %v753_v37  ;;  %v1173_v40 = vmul.f32 -1.442695, %v680_v38  ;;  %v683_v41 = vpop.xlane.xlu0 %682  ;;  %v805_v37 = vld [vmem:[%s1602_s23 + $0x20] sm:$0xff] }
 0x189   : > { %v1359_v42 = vpop.eup %1358  ;;  %v756_v43 = vadd.f32 1.0, %v1357_v39  ;;  %v1174_v52 = vmul.f32 -1.442695, %v683_v41  ;;  %v808_v41 = vld [vmem:[%s1602_s23 + $0x38] sm:$0xff] }
 0x18a   : > { %v754_v44 = vadd.f32 1.0, %v1359_v42  ;;  %1368 = vpow2.f32 %v1173_v40 }
 0x18b   : > { %1370 = vrcp.f32 %v756_v43  ;;  %v686_v45 = vpop.xlane.xlu1 %685 }
 0x18c   : > { %v1361_v46 = vpop.eup %1360  ;;  %1372 = vrcp.f32 %v754_v44  ;;  %v1175_v47 = vmul.f32 -1.442695, %v686_v45  ;;  %v689_v49 = vpop.xlane.xlu0 %688  ;;  %v812_v44 = vld [vmem:[%s1602_s23 + $0x58] sm:$0xff] }
 0x18d   : > { %v755_v50 = vadd.f32 1.0, %v1361_v46  ;;  %v1176_v62 = vmul.f32 -1.442695, %v689_v49 }
 0x18e   : > { %1374 = vpow2.f32 %v1175_v47 }
 0x18f   : > { %v692_v51 = vpop.xlane.xlu1 %691  ;;  %1376 = vpow2.f32 %v1172_v48 }
 0x190   : > { %v1363_v53 = vpop.eup %1362  ;;  %v1177_v54 = vmul.f32 -1.442695, %v692_v51  ;;  %1378 = vrcp.f32 %v755_v50  ;;  %v695_v58 = vpop.xlane.xlu0 %694  ;;  %v814_v50 = vld [vmem:[%s1602_s23 + $0x68] sm:$0xff] }
 0x191   : > { %v1365_v56 = vpop.eup %1364  ;;  %v758_v57 = vadd.f32 1.0, %v1363_v53  ;;  %v1178_v4 = vmul.f32 -1.442695, %v695_v58  ;;  %v807_v53 = vld [vmem:[%s1602_s23 + $0x30] sm:$0xff] }
 0x192   : > { %v1367_v59 = vpop.eup %1366  ;;  %1380 = vpow2.f32 %v1177_v54  ;;  %v757_v0 = vadd.f32 1.0, %v1365_v56 }
 0x193   : > { %v698_v60 = vpop.xlane.xlu1 %697  ;;  %v817_v61 = vmul.f32 %v1367_v59, %v801_v55  ;;  %1382 = vpow2.f32 %v1174_v52  ;;  %v816_v59 = vld [vmem:[%s1602_s23 + $0x78] sm:$0xff] }
 0x194   : > { %v1369_v63 = vpop.eup %1368  ;;  %1384 = vrcp.f32 %v758_v57  ;;  %v1179_v1 = vmul.f32 -1.442695, %v698_v60  ;;  %v701_v10 = vpop.xlane.xlu0 %700  ;;  %v809_v57 = vld [vmem:[%s1602_s23 + $0x40] sm:$0xff] }
 0x195   : > { %v1371_v3 = vpop.eup %1370  ;;  %851 = vperm.xlu0 %1352, %v817_v61   ;;  %v760_v6 = vadd.f32 1.0, %v1369_v63  ;;  %v1180_v16 = vmul.f32 -1.442695, %v701_v10  ;;  %v833_v10 = vld [vmem:[%s1628_s9] sm:$0xff] }
 0x196   : > { %v1373_v5 = vpop.eup %1372  ;;  %1386 = vpow2.f32 %v1179_v1  ;;  %v820_v14 = vmul.f32 %v1371_v3, %v804_v7  ;;  %v813_v3 = vld [vmem:[%s1602_s23 + $0x60] sm:$0xff] }
 0x197   : > { %v704_v8 = vpop.xlane.xlu1 %703  ;;  %v818_v9 = vmul.f32 %v1373_v5, %v802_v2  ;;  %1388 = vpow2.f32 %v1176_v62  ;;  %v811_v62 = vld [vmem:[%s1602_s23 + $0x50] sm:$0xff] }
 0x198   : > { %v1375_v11 = vpop.eup %1374  ;;  %1390 = vrcp.f32 %v757_v0  ;;  %v1181_v12 = vmul.f32 -1.442695, %v704_v8  ;;  %v945_v8 = vld [vmem:[%s1676_s6] sm:$0xff] }
 0x199   : > { %v762_v13 = vadd.f32 1.0, %v1375_v11  ;;  %856 = vperm.xlu1 %1353, %v818_v9   ;;  %1392 = vpow2.f32 %v1178_v4  ;;  %v1377_v15 = vpop.eup %1376  ;;  %v1445_v9 = vmov 0.0  }
 0x19a   : > { %1394 = vrcp.f32 %v760_v6  ;;  %v1379_v18 = vpop.eup %1378  ;;  %v759_v24 = vadd.f32 1.0, %v1377_v15  ;;  %v815_v6 = vld [vmem:[%s1602_s23 + $0x70] sm:$0xff]  ;;  %1288 = vmatprep.mubr.msk.f32.mxu1 %vm1444_vm1, %v1445_v9 }
 0x19b   : > { %1396 = vrcp.f32 %v762_v13  ;;  %v819_v26 = vmul.f32 %v1379_v18, %v803_v20  ;;  %v835_v20 = vld [vmem:[%s1628_s9 + $0x10] sm:$0xff] }
 0x19c   : > { %v1381_v19 = vpop.eup %1380  ;;  %1398 = vpow2.f32 %v1181_v12  ;;  %v834_v12 = vld [vmem:[%s1628_s9 + $0x8] sm:$0xff] }
 0x19d   : > { %v1383_v21 = vpop.eup %1382  ;;  %v764_v22 = vadd.f32 1.0, %v1381_v19  ;;  %866 = vperm.xlu1 %1353, %v820_v14   ;;  %1400 = vpow2.f32 %v1180_v16  ;;  %v836_v19 = vld [vmem:[%s1628_s9 + $0x18] sm:$0xff] }
 0x19e   : > { %v1385_v23 = vpop.eup %1384  ;;  %v761_v28 = vadd.f32 1.0, %v1383_v21 }
 0x19f   : > { %1402 = vrcp.f32 %v764_v22  ;;  %v822_v31 = vmul.f32 %v1385_v23, %v806_v25 }
 0x1a0   : > { %v1387_v27 = vpop.eup %1386  ;;  %1404 = vrcp.f32 %v759_v24 }
 0x1a1   : > { %v1389_v29 = vpop.eup %1388  ;;  %v766_v30 = vadd.f32 1.0, %v1387_v27  ;;  %861 = vperm.xlu1 %1353, %v819_v26   ;;  %v838_v26 = vld [vmem:[%s1628_s9 + $0x28] sm:$0xff]  ;;  %v837_v27 = vld [vmem:[%s1628_s9 + $0x20] sm:$0xff] }
 0x1a2   : > { %v1391_v32 = vpop.eup %1390  ;;  %v763_v36 = vadd.f32 1.0, %v1389_v29 }
 0x1a3   : > { %v1393_v33 = vpop.eup %1392  ;;  %1406 = vrcp.f32 %v766_v30  ;;  %v821_v43 = vmul.f32 %v1391_v32, %v805_v37 }
 0x1a4   : > { %v1395_v35 = vpop.eup %1394  ;;  %1408 = vrcp.f32 %v761_v28  ;;  %v765_v46 = vadd.f32 1.0, %v1393_v33 }
 0x1a5   : > { %v1397_v38 = vpop.eup %1396  ;;  %876 = vperm.xlu1 %1353, %v822_v31   ;;  %1410 = vrcp.f32 %v763_v36  ;;  %v824_v48 = vmul.f32 %v1395_v35, %v808_v41  ;;  %v839_v35 = vld [vmem:[%s1628_s9 + $0x30] sm:$0xff]  ;;  %v841_v41 = vld [vmem:[%s1628_s9 + $0x40] sm:$0xff] }
 0x1a6   : > { %v1399_v39 = vpop.eup %1398  ;;  %v826_v40 = vmul.f32 %v1397_v38, %v810_v34  ;;  %v840_v34 = vld [vmem:[%s1628_s9 + $0x38] sm:$0xff] }
 0x1a7   : > { %v768_v42 = vadd.f32 1.0, %v1399_v39  ;;  %v1401_v45 = vpop.eup %1400  ;;  %v842_v39 = vld [vmem:[%s1628_s9 + $0x48] sm:$0xff] }
 0x1a8   : > { %896 = vperm.xlu0 %1352, %v826_v40   ;;  %v767_v52 = vadd.f32 1.0, %v1401_v45 }
 0x1a9   : > { %v1403_v47 = vpop.eup %1402  ;;  %1412 = vrcp.f32 %v768_v42  ;;  %871 = vperm.xlu1 %1353, %v821_v43  }
 0x1aa   : > { %v828_v49 = vmul.f32 %v1403_v47, %v812_v44  ;;  %v1405_v51 = vpop.eup %1404  ;;  %1414 = vrcp.f32 %v765_v46  ;;  %v844_v46 = vld [vmem:[%s1628_s9 + $0x58] sm:$0xff]  ;;  %v843_v47 = vld [vmem:[%s1628_s9 + $0x50] sm:$0xff] }
 0x1ab   : > { %v823_v58 = vmul.f32 %v1405_v51, %v807_v53  ;;  %1416 = vrcp.f32 %v767_v52  ;;  %v846_v53 = vld [vmem:[%s1628_s9 + $0x68] sm:$0xff] }
 0x1ac   : > { %906 = vperm.xlu0 %1352, %v828_v49  }
 0x1ad   : > { %v1407_v54 = vpop.eup %1406  ;;  %886 = vperm.xlu1 %1353, %v824_v48  }
 0x1ae   : > { %v1409_v55 = vpop.eup %1408  ;;  %v830_v56 = vmul.f32 %v1407_v54, %v814_v50  ;;  %v845_v54 = vld [vmem:[%s1628_s9 + $0x60] sm:$0xff] }
 0x1af   : > { %v825_v60 = vmul.f32 %v1409_v55, %v809_v57  ;;  %v1411_v61 = vpop.eup %1410 }
 0x1b0   : > { %916 = vperm.xlu0 %1352, %v830_v56   ;;  %v827_v1 = vmul.f32 %v1411_v61, %v811_v62  ;;  %v847_v61 = vld [vmem:[%s1628_s9 + $0x70] sm:$0xff] }
 0x1b1   : > { %881 = vperm.xlu1 %1353, %v823_v58  }
 0x1b3   : > { %v1413_v63 = vpop.eup %1412 }
 0x1b4   : > { %v832_v0 = vmul.f32 %v1413_v63, %v816_v59  ;;  %v1415_v2 = vpop.eup %1414  ;;  %v848_v59 = vld [vmem:[%s1628_s9 + $0x78] sm:$0xff] }
 0x1b5   : > { %891 = vperm.xlu1 %1353, %v825_v60   ;;  %v829_v4 = vmul.f32 %v1415_v2, %v813_v3  ;;  %v1417_v5 = vpop.eup %1416 }
 0x1b6   : > { %926 = vperm.xlu0 %1352, %v832_v0   ;;  %v831_v7 = vmul.f32 %v1417_v5, %v815_v6  ;;  %v1446_v5 = vmov 1.0  }
 0x1b9   : > { %901 = vperm.xlu1 %1353, %v827_v1  }
 0x1bd   : > { %911 = vperm.xlu1 %1353, %v829_v4   ;;  %v1182_v4 = vld [vmem:[%s368_s12] ss:$0 sm:$0xff] }
 0x1c1   : > { %921 = vperm.xlu1 %1353, %v831_v7  }
 0x1c5   : > { %948 = vperm.xlu1 %1353, %v945_v8  }
 0x214   : > { %v852_v11 = vpop.permute.xlu0 %851 }
 0x215   : > { %v929_v14 = vmul.f32 %v852_v11, %v833_v10 }
 0x218   : > { %v857_v13 = vpop.permute.xlu1 %856 }
 0x219   : > { %v930_v15 = vmul.f32 %v857_v13, %v834_v12 }
 0x21b   : > { %v1300_v16 = vpack.c.bf16 %v930_v15, %v929_v14 }
 0x21c   : > { %v867_v18 = vpop.permute.xlu1 %866 }
 0x21d   : > { %1301 = vmatpush3.bf16.msra.mxu1 %v1300_v16  ;;  %v932_v22 = vmul.f32 %v867_v18, %v836_v19 }
 0x21e   : > { %1302 = vmatprep.subr.bf16.mxu1 %v1443_v17 }
 0x220   : > { %v862_v21 = vpop.permute.xlu1 %861 }
 0x221   : > { %v931_v23 = vmul.f32 %v862_v21, %v835_v20 }
 0x223   : > { %v1303_v24 = vpack.c.bf16 %v932_v22, %v931_v23 }
 0x224   : > { %v877_v25 = vpop.permute.xlu1 %876 }
 0x225   : > { %1304 = vmatpush3.bf16.msra.mxu1 %v1303_v24  ;;  %v934_v29 = vmul.f32 %v877_v25, %v838_v26 }
 0x226   : > { %1305 = vmatprep.subr.bf16.mxu1 %v1443_v17 }
 0x227   : > { %v897_v32 = vpop.permute.xlu0 %896 }
 0x228   : > { %v872_v28 = vpop.permute.xlu1 %871  ;;  %v938_v44 = vmul.f32 %v897_v32, %v842_v39 }
 0x229   : > { %v933_v30 = vmul.f32 %v872_v28, %v837_v27 }
 0x22b   : > { %v1306_v31 = vpack.c.bf16 %v934_v29, %v933_v30  ;;  %v907_v40 = vpop.permute.xlu0 %906 }
 0x22c   : > { %v887_v33 = vpop.permute.xlu1 %886  ;;  %v940_v51 = vmul.f32 %v907_v40, %v844_v46 }
 0x22d   : > { %1307 = vmatpush3.bf16.msra.mxu1 %v1306_v31  ;;  %v936_v37 = vmul.f32 %v887_v33, %v840_v34 }
 0x22e   : > { %1308 = vmatprep.subr.bf16.mxu1 %v1443_v17 }
 0x22f   : > { %v917_v49 = vpop.permute.xlu0 %916 }
 0x230   : > { %v882_v36 = vpop.permute.xlu1 %881  ;;  %v942_v57 = vmul.f32 %v917_v49, %v846_v53 }
 0x231   : > { %v935_v38 = vmul.f32 %v882_v36, %v839_v35 }
 0x233   : > { %v1309_v42 = vpack.c.bf16 %v936_v37, %v935_v38 }
 0x234   : > { %v892_v43 = vpop.permute.xlu1 %891 }
 0x235   : > { %v937_v45 = vmul.f32 %v892_v43, %v841_v41  ;;  %1310 = vmatpush3.bf16.msra.mxu1 %v1309_v42  ;;  %v927_v60 = vpop.permute.xlu0 %926 }
 0x236   : > { %1311 = vmatprep.subr.bf16.mxu1 %v1443_v17  ;;  %v944_v0 = vmul.f32 %v927_v60, %v848_v59 }
 0x237   : > { %v1312_v48 = vpack.c.bf16 %v938_v44, %v937_v45 }
 0x238   : > { %v902_v50 = vpop.permute.xlu1 %901 }
 0x239   : > { %v939_v52 = vmul.f32 %v902_v50, %v843_v47  ;;  %1313 = vmatpush3.bf16.msra.mxu1 %v1312_v48 }
 0x23a   : > { %1314 = vmatprep.subr.bf16.mxu1 %v1443_v17 }
 0x23b   : > { %v1315_v55 = vpack.c.bf16 %v940_v51, %v939_v52 }
 0x23c   : > { %v912_v56 = vpop.permute.xlu1 %911 }
 0x23d   : > { %v941_v58 = vmul.f32 %v912_v56, %v845_v54  ;;  %1316 = vmatpush3.bf16.msra.mxu1 %v1315_v55 }
 0x23e   : > { %1317 = vmatprep.subr.bf16.mxu1 %v1443_v17 }
 0x23f   : > { %v1318_v62 = vpack.c.bf16 %v942_v57, %v941_v58 }
 0x240   : > { %v922_v63 = vpop.permute.xlu1 %921 }
 0x241   : > { %v943_v1 = vmul.f32 %v922_v63, %v847_v61  ;;  %1319 = vmatpush3.bf16.msra.mxu1 %v1318_v62 }
 0x242   : > { %1320 = vmatprep.subr.bf16.mxu1 %v1443_v17 }
 0x243   : > { %v1321_v2 = vpack.c.bf16 %v944_v0, %v943_v1 }
 0x244   : > { %v949_v3 = vpop.permute.xlu1 %948 }
 0x245   : > { %1322 = vmatpush3.bf16.msra.mxu1 %v1321_v2  ;;  %vm954_vm2 = vcmp.eq.s32.totalorder %v949_v3, %v1182_v4 }
 0x248   : > { %1289 = vmatmul.mubr.msk.f32.vlgmr.msra.gmra.mrb[0].mxu1 %vm954_vm2, %v1446_v5 }
 0x31b   : > { %v1024_v6 = vpop.f32.mrb[0].mxu1 }
 0x31c   : > { %v1290_v7 = vpop.f32.mrb[1].mxu1  ;;  %1029 = vst [vmem:[%s405_s16] sm:$0xff] %v1024_v6 }
 0x31d PF: > { %s17_s26 = sadd.s32 1, %s1440_s26   ;;  %s1678_s24 = smov %s1436_s25 }
 0x31e   : > { %p14_p6 = scmp.ge.s32.totalorder %s17_s26, 4   ;;  %s1679_s25 = smov %s1681_s27 }
 0x320   :  { %16 = sbr.rel (!%p14_p6) target bundleno = 2 (0x2), region = 94 }

</bundles_post_ra>
